<compile_context>
chip_gen: v7x
topology: tpu7x:2x2x1
jax: 0.10.0
libtpu: 0.0.40
codegen_flags: <defaults>
</compile_context>

<pallas_src>
import functools

import jax
import jax.numpy as jnp
from jax.experimental import pallas as pl
from jax.experimental.pallas import tpu as pltpu


def _frame_attn_kernel(x_ref, w_ref, out_ref, attn_ref):
    # x_ref:    (BB, T, D)  VMEM, native dtype
    # w_ref:    (1, D)      VMEM, fp32 attn_proj weight
    # out_ref:  (BB, D)     x.dtype
    # attn_ref: (BB, T)     fp32
    #
    # NOTE: when B % block_b != 0 the padded batch rows of the edge block flow
    # through exp() of whatever data was fetched; each row is independent and
    # the masked edge-block store discards those rows, so this is safe.  Do
    # not "optimize" by assuming the pad rows are zeros.
    x = x_ref[...]
    w = w_ref[...]                                    # (1, D) fp32

    # scores[b, t] = <x[b, t, :], w>   -- VPU multiply + lane-reduce over D.
    # (attn_proj bias omitted: softmax is shift-invariant.)
    scores = jnp.sum(x * w[None, :, :], axis=-1)      # (BB, T) fp32

    # Numerically stable softmax over T; intermediates stay fp32 and dense.
    m = jnp.max(scores, axis=-1, keepdims=True)       # (BB, 1)
    e = jnp.exp(scores - m)                           # EUP
    denom = jnp.sum(e, axis=-1, keepdims=True)        # (BB, 1)
    weights = e * pl.reciprocal(denom, approx=True)   # EUP vrcp; (BB, T) fp32

    attn_ref[...] = weights.astype(attn_ref.dtype)

    # out[b, :] = sum_t weights[b, t] * x[b, t, :]
    # VPU multiply (fp32 accumulation) + sublane-reduce over T.
    out = jnp.sum(weights[:, :, None] * x, axis=1)    # (BB, D) fp32
    out_ref[...] = out.astype(out_ref.dtype)


def _vmem_capacity_bytes():
    try:
        info = pltpu.get_tpu_info()
        cap = getattr(info, "vmem_capacity_bytes", None)
        if cap:
            return int(cap)
    except Exception:
        pass
    return 64 * 1024 * 1024  # v7x-safe fallback


def _choose_block_b(B, T, D, itemsize, vmem_cap):
    """Batch rows per grid step: a multiple of 8 (or == B), sized for MiB-scale
    x blocks while keeping the per-step working set well under VMEM."""
    per_row_x = T * D * itemsize                       # native x block, per row
    per_row_work = T * D * (2 * itemsize + 2 * 4)      # 2 x buffers + 2 fp32 intermediates
    target = max(1 << 20, min(4 << 20, vmem_cap // 16))
    bb = min(max(target // per_row_x, 8),
             max((vmem_cap // 2) // per_row_work, 8))
    bb = max(8, (bb // 8) * 8)
    if bb >= B:
        # Whole batch fits in one step.  Split in two when that keeps blocks
        # sublane-dense so the "parallel" axis can use both v7x TensorCores.
        half = ((B // 2) // 8) * 8
        return half if half >= 8 else B
    return bb


@functools.partial(jax.jit, static_argnames=("block_b",))
def light_frame_attention(x, w, b=None, *, block_b=None):
    """LightFrameAttention forward (inference mode).

    x: [B, T, D]; w: [D] (attn_proj weight); b: attn_proj bias -- accepted for
    API parity with the module but unused (softmax is shift-invariant, so a
    per-row constant bias cannot affect either output).
    Returns (out [B, D] in x.dtype, attn_weights [B, T] fp32).
    """
    del b
    B, T, D = x.shape
    itemsize = jnp.dtype(x.dtype).itemsize
    vmem_cap = _vmem_capacity_bytes()
    if block_b is None:
        block_b = _choose_block_b(B, T, D, itemsize, vmem_cap)
    num_steps = pl.cdiv(B, block_b)

    w2 = w.reshape(1, D).astype(jnp.float32)

    # Input pipelining: default double-buffering; deepen to 3 only when blocks
    # are forced small and the grid is long (fallback -- large blocks are the
    # preferred fix and are applied above).
    x_block_bytes = block_b * T * D * itemsize
    if num_steps >= 3 and x_block_bytes < (256 << 10):
        x_spec = pl.BlockSpec((block_b, T, D), lambda i: (i, 0, 0),
                              pipeline_mode=pl.Buffered(3))
        n_buf = 3
    else:
        x_spec = pl.BlockSpec((block_b, T, D), lambda i: (i, 0, 0))
        n_buf = 2

    # VMEM budget: buffered x blocks + two fp32 elementwise intermediates +
    # double-buffered outputs + weight row + headroom; capped per generation
    # (~57 MiB on v7x, ~115 MiB on v5e/v6e) via get_tpu_info.
    needed = (n_buf * x_block_bytes
              + 2 * block_b * T * D * 4
              + 2 * block_b * (D * itemsize + T * 4)
              + D * 4
              + (2 << 20))
    vmem_limit = int(min(max(needed, 32 << 20), int(vmem_cap * 0.9)))

    cost = pl.CostEstimate(
        flops=4 * B * T * D,
        transcendentals=B * T + B,
        bytes_accessed=B * T * D * itemsize + B * D * itemsize + B * T * 4 + D * 4,
    )

    out, attn = pl.pallas_call(
        _frame_attn_kernel,
        grid=(num_steps,),
        in_specs=[
            x_spec,
            pl.BlockSpec((1, D), lambda i: (0, 0)),
        ],
        out_specs=(
            pl.BlockSpec((block_b, D), lambda i: (i, 0)),
            pl.BlockSpec((block_b, T), lambda i: (i, 0)),
        ),
        out_shape=(
            jax.ShapeDtypeStruct((B, D), x.dtype),
            jax.ShapeDtypeStruct((B, T), jnp.float32),
        ),
        compiler_params=pltpu.CompilerParams(
            dimension_semantics=("parallel",),
            vmem_limit_bytes=vmem_limit,
        ),
        cost_estimate=cost,
    )(x, w2)
    return out, attn


def _reference(x, w, b):
    # Pure-JAX reference (includes the bias, demonstrating shift-invariance).
    scores = jnp.sum(x * w[None, None, :], axis=-1) + b
    weights = jax.nn.softmax(scores, axis=-1)
    out = jnp.sum(weights[..., None] * x, axis=1)
    return out, weights


def _check(B, T, D, key, block_b=None):
    kx, kw, kb = jax.random.split(key, 3)
    x = jax.random.normal(kx, (B, T, D), dtype=jnp.float32)
    bound = 1.0 / (D ** 0.5)  # nn.Linear(D, 1) init range
    w = jax.random.uniform(kw, (D,), minval=-bound, maxval=bound,
                           dtype=jnp.float32)
    b = jax.random.uniform(kb, (), minval=-bound, maxval=bound,
                           dtype=jnp.float32)

    out, attn = light_frame_attention(x, w, b, block_b=block_b)
    out = jax.block_until_ready(out)
    attn = jax.block_until_ready(attn)

    ref_out, ref_attn = _reference(x, w, b)
    # approx=True reciprocal + reduction-order differences: low-order bits only.
    assert jnp.allclose(out, ref_out, atol=2e-3, rtol=2e-3), "out mismatch"
    assert jnp.allclose(attn, ref_attn, atol=2e-3, rtol=2e-3), "attn mismatch"


if __name__ == "__main__":
    key = jax.random.PRNGKey(0)
    k1, k2, k3 = jax.random.split(key, 3)
    # Small module-consistent shape: single grid step, block_b == B == 2.
    _check(B=2, T=8, D=32, key=k1)
    # Two grid steps (block_b=8), full 128-lane D, sublane-dense blocks.
    _check(B=16, T=8, D=128, key=k2)
    # Partial edge block: B=12 with block_b=8 exercises masked output writes.
    _check(B=12, T=8, D=128, key=k3, block_b=8)
    print("KERNEL_OK")
</pallas_src>

<mosaic_0001>
module attributes {stable_mosaic.version = 11 : i64} {
  func.func @_frame_attn_kernel(%arg0: i32, %arg1: memref<2x8x32xf32, #tpu.memory_space<vmem>>, %arg2: memref<1x32xf32, #tpu.memory_space<vmem>>, %arg3: memref<2x32xf32, #tpu.memory_space<vmem>>, %arg4: memref<2x8xf32, #tpu.memory_space<vmem>>) attributes {dimension_semantics = [#tpu.dimension_semantics<parallel>], iteration_bounds = array<i64: 1>, scalar_prefetch = 0 : i64, scratch_operands = 0 : i64, tpu.core_type = #tpu.core_type<tc>, window_params = [{transform_indices = @transform_0, window_bounds = array<i64: 2, 8, 32>}, {pipeline_mode = #tpu.pipeline_mode<synchronous>, transform_indices = @transform_1, window_bounds = array<i64: 1, 32>}, {transform_indices = @transform_2, window_bounds = array<i64: 2, 32>}, {transform_indices = @transform_3, window_bounds = array<i64: 2, 8>}]} {
    %c0 = arith.constant 0 : index
    %c0_0 = arith.constant 0 : index
    %c0_1 = arith.constant 0 : index
    %0 = vector.load %arg1[%c0, %c0_0, %c0_1] : memref<2x8x32xf32, #tpu.memory_space<vmem>>, vector<2x8x32xf32>
    %c0_2 = arith.constant 0 : index
    %c0_3 = arith.constant 0 : index
    %1 = vector.load %arg2[%c0_2, %c0_3] : memref<1x32xf32, #tpu.memory_space<vmem>>, vector<1x32xf32>
    %2 = vector.shape_cast %1 : vector<1x32xf32> to vector<1x1x32xf32>
    %3 = vector.broadcast %2 : vector<1x1x32xf32> to vector<2x8x32xf32>
    %4 = arith.mulf %0, %3 : vector<2x8x32xf32>
    %cst = arith.constant dense<0.000000e+00> : vector<2x8xf32>
    %5 = vector.multi_reduction <add>, %4, %cst [2] : vector<2x8x32xf32> to vector<2x8xf32>
    %cst_4 = arith.constant dense<0xFF800000> : vector<2xf32>
    %6 = vector.multi_reduction <maximumf>, %5, %cst_4 [1] : vector<2x8xf32> to vector<2xf32>
    %7 = vector.shape_cast %6 : vector<2xf32> to vector<2x1xf32>
    %8 = vector.broadcast %7 : vector<2x1xf32> to vector<2x8xf32>
    %9 = arith.subf %5, %8 : vector<2x8xf32>
    %10 = math.exp %9 : vector<2x8xf32>
    %cst_5 = arith.constant dense<0.000000e+00> : vector<2xf32>
    %11 = vector.multi_reduction <add>, %10, %cst_5 [1] : vector<2x8xf32> to vector<2xf32>
    %12 = vector.shape_cast %11 : vector<2xf32> to vector<2x1xf32>
    %13 = tpu.reciprocal %12 {approx = true} : vector<2x1xf32> -> vector<2x1xf32>
    %14 = vector.broadcast %13 : vector<2x1xf32> to vector<2x8xf32>
    %15 = arith.mulf %10, %14 : vector<2x8xf32>
    %c0_6 = arith.constant 0 : index
    %c0_7 = arith.constant 0 : index
    %16 = vector.load %arg4[%c0_6, %c0_7] : memref<2x8xf32, #tpu.memory_space<vmem>>, vector<2x8xf32>
    tpu.vector_store %arg4[%c0_6, %c0_7], %15 {strides = array<i32>} : memref<2x8xf32, #tpu.memory_space<vmem>>, vector<2x8xf32>,
    %17 = vector.shape_cast %15 : vector<2x8xf32> to vector<2x8x1xf32>
    %18 = vector.broadcast %17 : vector<2x8x1xf32> to vector<2x8x32xf32>
    %19 = arith.mulf %18, %0 : vector<2x8x32xf32>
    %cst_8 = arith.constant dense<0.000000e+00> : vector<2x32xf32>
    %20 = vector.multi_reduction <add>, %19, %cst_8 [1] : vector<2x8x32xf32> to vector<2x32xf32>
    %c0_9 = arith.constant 0 : index
    %c0_10 = arith.constant 0 : index
    %21 = vector.load %arg3[%c0_9, %c0_10] : memref<2x32xf32, #tpu.memory_space<vmem>>, vector<2x32xf32>
    tpu.vector_store %arg3[%c0_9, %c0_10], %20 {strides = array<i32>} : memref<2x32xf32, #tpu.memory_space<vmem>>, vector<2x32xf32>,
    return
  }
  func.func @transform_0(%arg0: i32) -> (i32, i32, i32) {
    %c0_i32 = arith.constant 0 : i32
    %c0_i32_0 = arith.constant 0 : i32
    %c0_i32_1 = arith.constant 0 : i32
    return %arg0, %c0_i32, %c0_i32_0 : i32, i32, i32
  }
  func.func @transform_1(%arg0: i32) -> (i32, i32) {
    %c0_i32 = arith.constant 0 : i32
    %c0_i32_0 = arith.constant 0 : i32
    %c0_i32_1 = arith.constant 0 : i32
    return %c0_i32, %c0_i32_0 : i32, i32
  }
  func.func @transform_2(%arg0: i32) -> (i32, i32) {
    %c0_i32 = arith.constant 0 : i32
    %c0_i32_0 = arith.constant 0 : i32
    return %arg0, %c0_i32 : i32, i32
  }
  func.func @transform_3(%arg0: i32) -> (i32, i32) {
    %c0_i32 = arith.constant 0 : i32
    %c0_i32_0 = arith.constant 0 : i32
    return %arg0, %c0_i32 : i32, i32
  }
}

</mosaic_0001>

<bundles_post_ra>
// kernel: light_frame_attention.1
= control target key start
LH: loop header
LB: loop body
LE: loop exit
PB: predicated region body
PF: predicated region fallthrough
CT: control target
= control target key end

     0   :  { %9 = vsyncpa [#allocation3], 0  ;;  %s357_s0 = inlined_call_operand.hbm [shape: f32[2,8,32], index: 0, kind: input, shape index: {}]   ;;  %s358_s1 = inlined_call_operand.vmem [shape: f32[1,32], index: 1, kind: input, shape index: {}]   ;;  %s359_s2 = inlined_call_operand.hbm [shape: f32[2,32], index: 2, kind: output, shape index: {0}]   ;;  %s360_s3 = inlined_call_operand.hbm [shape: f32[2,8], index: 3, kind: output, shape index: {1}]  }
   0x1   :  { %10 = vsyncpa [#allocation4], 0 }
   0x2   :  { %11 = vsyncpa [#allocation7], 0  ;;  %s277_s12 = smov [#allocation2]   ;;  %s205_s16 = scalar_lea.hbm %s357_s0, 256 }
   0x3   :  { %s17_s13 = sshll.u32 %s277_s12, 4  ;;  %p206_p0 = scmp.ne.s32.totalorder %s357_s0, %s205_s16  ;;  %s18_s13 = int_to_ptr.vmem [resolvable:$true] %s17_s13 }
   0x4   :  { %p209_p1 = scmp.lt.u32.totalorder %s205_s16, %s357_s0 }
   0x6   :  { %p211_p2 = pnand %p209_p1, %p206_p0 }
   0x8   :  { %214 = shalt.err (!%p211_p2)
}
   0x9   :  { %s215_s21 = scalar_lea.vmem %s18_s13, 256  ;;  %p220_p4 = scmp.lt.s32.totalorder %s18_s13, %s18_s13 }
   0xa   :  { %p216_p3 = scmp.ne.s32.totalorder %s18_s13, %s215_s21  ;;  %p221_p5 = scmp.lt.s32.totalorder %s215_s21, %s215_s21 }
   0xc   :  { %p222_p6 = por %p221_p5, %p220_p4 }
   0xe   :  { %p223_p7 = pnand %p222_p6, %p216_p3 }
  0x10   :  { %226 = shalt.err (!%p223_p7)
}
  0x11   :  { %s278_s22 = smov 128   ;;  %s279_s23 = smov 8  }
  0x12   :  { %23 = dma.hbm_to_vmem [thread:$0]  %s357_s0, 256, %s18_s13, [#allocation3], %s278_s22, %s278_s22, %s279_s23  }
  0x13   :  { %271 = dma.done.wait [#allocation3], 256  }
  0x14   :  { %272 = vsyncadd [#allocation3], 4294967040  ;;  %v29_v0 = vld [vmem:[#allocation2] sm:$0xff]  ;;  %vm40_vm0 = vcmask 261120   ;;  %v318_v2 = vld [vmem:[#allocation2 + $0x8] sm:$0xff]  ;;  %v49_v7 = vlaneseq  ;;  %vm59_vm1 = vcmask 1041409  }
  0x15   :  { %v190_v1 = vld [vmem:[%s358_s1] ss:$0 sm:$0xff]  ;;  %vm62_vm2 = vcmask 58368   ;;  %v280_v17 = vmov 0   ;;  %s281_s0 = smov [#allocation6]  }
  0x16   :  { %v38_v3 = vmul.f32 %v190_v1, %v29_v0  ;;  %v39_v4 = vmul.f32 %v190_v1, %v318_v2  ;;  %v50_v8 = vand.u32 127, %v49_v7  ;;  %v52_v9 = vshrl.u32 %v49_v7, 7  ;;  %198 = vset.pattern.permute.xlu0 %v280_v17  ;;  %197 = vset.pattern.permute.xlu1 %v280_v17  ;;  %s177_s1 = sshll.u32 %s281_s0, 4  ;;  %s178_s1 = int_to_ptr.vmem [resolvable:$true] %s177_s1 }
  0x17   :  { %s227_s28 = scalar_lea.vmem %s178_s1, 32  ;;  %p232_p9 = scmp.lt.s32.totalorder %s178_s1, %s178_s1 }
  0x18   :  { %v41_v5 = vsel %vm40_vm0, %v38_v3, 0.0  ;;  %v44_v6 = vsel %vm40_vm0, %v39_v4, 0.0  ;;  %v53_v11 = vsub.s32 %v50_v8, %v52_v9  ;;  %v69_v18 = vsub.s32 0, %v52_v9  ;;  %p228_p8 = scmp.ne.s32.totalorder %s178_s1, %s227_s28  ;;  %p233_p10 = scmp.lt.s32.totalorder %s227_s28, %s227_s28 }
  0x19   :  { %42 = vadd.xlane.f32.xlu0 %v41_v5  ;;  %v73_v19 = vsub.s32 1, %v52_v9 }
  0x1a   :  { %p234_p11 = por %p233_p10, %p232_p9 }
  0x1c   :  { %p235_p12 = pnand %p234_p11, %p228_p8 }
  0x1d   :  { %45 = vadd.xlane.f32.xlu0 %v44_v6 }
  0xa6   :  { %v43_v10 = vpop.xlane.xlu0 %42 }
  0xa7   :  { %v54_v13 = vrot.slane %v43_v10, %v53_v11 }
  0xaa   :  { %v46_v12 = vpop.xlane.xlu0 %45 }
  0xab   :  { %v58_v14 = vrot.slane %v46_v12, %v53_v11 }
  0xad   :  { %v60_v15 = vsel %vm59_vm1, %v58_v14, %v54_v13 }
  0xae   :  { %v63_v16 = vsel %vm62_vm2, %v60_v15, -inf }
  0xaf   :  { %64 = vmax.xlane.f32.xlu1 %v63_v16 }
 0x13c   :  { %v65_v20 = vpop.xlane.xlu1 %64 }
 0x13d   :  { %v70_v21 = vrot.slane %v65_v20, %v69_v18  ;;  %v74_v22 = vrot.slane %v65_v20, %v73_v19 }
 0x13f   :  { %v77_v23 = vsub.f32 %v43_v10, %v70_v21  ;;  %v78_v24 = vsub.f32 %v46_v12, %v74_v22 }
 0x141   :  { %v79_v25 = vmul.f32 1.442695, %v77_v23  ;;  %v81_v26 = vmul.f32 1.442695, %v78_v24 }
 0x143   :  { %199 = vpow2.f32 %v79_v25 }
 0x144   :  { %201 = vpow2.f32 %v81_v26 }
 0x14d   :  { %v200_v27 = vpop.eup %199 }
 0x14e   :  { %v202_v28 = vpop.eup %201  ;;  %86 = vperm.xlu1 %197, %v200_v27  }
 0x14f   :  { %89 = vperm.xlu0 %198, %v202_v28  }
 0x1cd   :  { %v87_v29 = vpop.permute.xlu1 %86 }
 0x1ce   :  { %v90_v30 = vpop.permute.xlu0 %89  ;;  %v94_v31 = vrot.slane %v87_v29, %v53_v11 }
 0x1cf   :  { %v98_v32 = vrot.slane %v90_v30, %v53_v11 }
 0x1d1   :  { %v99_v33 = vsel %vm59_vm1, %v98_v32, %v94_v31 }
 0x1d2   :  { %v101_v34 = vsel %vm62_vm2, %v99_v33, 0.0 }
 0x1d3   :  { %102 = vadd.xlane.f32.xlu1 %v101_v34 }
 0x260   :  { %v103_v35 = vpop.xlane.xlu1 %102 }
 0x261   :  { %203 = vrcp.f32 %v103_v35 }
 0x26b   :  { %v204_v36 = vpop.eup %203 }
 0x26c   :  { %v109_v37 = vrot.slane %v204_v36, %v69_v18  ;;  %v113_v39 = vrot.slane %v204_v36, %v73_v19 }
 0x26e   :  { %v116_v38 = vmul.f32 %v200_v27, %v109_v37  ;;  %v117_v40 = vmul.f32 %v202_v28, %v113_v39 }
 0x270   :  { %121 = vperm.xlu0 %198, %v116_v38  }
 0x274   :  { %124 = vperm.xlu0 %198, %v117_v40  }
 0x2ef   :  { %v122_v41 = vpop.permute.xlu0 %121 }
 0x2f0   :  { %v139_v42 = vmul.f32 %v122_v41, %v29_v0  ;;  %v129_v46 = vrot.slane %v122_v41, %v53_v11 }
 0x2f2   :  { %v141_v43 = vsel %vm40_vm0, %v139_v42, 0.0 }
 0x2f3   :  { %v142_v44 = vrot.slane %v141_v43, 4  ;;  %v125_v45 = vpop.permute.xlu0 %124 }
 0x2f4   :  { %v133_v47 = vrot.slane %v125_v45, %v53_v11  ;;  %v140_v48 = vmul.f32 %v125_v45, %v318_v2 }
 0x2f5   :  { %v143_v49 = vadd.f32 %v142_v44, %v141_v43 }
 0x2f6   :  { %v148_v50 = vsel %vm40_vm0, %v140_v48, 0.0  ;;  %v134_v51 = vsel %vm59_vm1, %v133_v47, %v129_v46 }
 0x2f7   :  { %v144_v52 = vrot.slane %v143_v49, 2  ;;  %v149_v53 = vrot.slane %v148_v50, 4  ;;  %136 = vst.msk [vmem:[#allocation6] sm:$0x3] %vm62_vm2, %v134_v51 }
 0x2f8   :  { %238 = shalt.err (!%p235_p12)
}
 0x2f9   :  { %s239_s4 = scalar_lea.hbm %s360_s3, 32 }
 0x2fa   :  { %p240_p13 = scmp.ne.s32.totalorder %s360_s3, %s239_s4  ;;  %p243_p0 = scmp.lt.u32.totalorder %s239_s4, %s360_s3 }
 0x2fc   :  { %p245_p1 = pnand %p243_p0, %p240_p13 }
 0x2fe   :  { %248 = shalt.err (!%p245_p1)
}
 0x2ff   :  { %180 = dma.vmem_to_hbm [thread:$0]  %s178_s1, 32, %s360_s3, [#allocation7]   ;;  %v145_v54 = vadd.f32 %v144_v52, %v143_v49  ;;  %v150_v55 = vadd.f32 %v149_v53, %v148_v50  ;;  %vm159_vm3 = vcmask 254976  }
 0x300   :  { %s282_s11 = smov [#allocation5]  }
 0x301   :  { %v151_v56 = vrot.slane %v150_v55, 2  ;;  %v146_v57 = vrot.slane %v145_v54, 1  ;;  %s167_s12 = sshll.u32 %s282_s11, 4  ;;  %s168_s12 = int_to_ptr.vmem [resolvable:$true] %s167_s12 }
 0x302   :  { %s249_s13 = scalar_lea.vmem %s168_s12, 32  ;;  %p254_p3 = scmp.lt.s32.totalorder %s168_s12, %s168_s12 }
 0x303   :  { %v152_v58 = vadd.f32 %v151_v56, %v150_v55  ;;  %v147_v61 = vadd.f32 %v146_v57, %v145_v54  ;;  %p250_p2 = scmp.ne.s32.totalorder %s168_s12, %s249_s13  ;;  %p255_p4 = scmp.lt.s32.totalorder %s249_s13, %s249_s13 }
 0x305   :  { %v153_v59 = vrot.slane %v152_v58, 1  ;;  %p256_p5 = por %p255_p4, %p254_p3 }
 0x307   :  { %v154_v60 = vadd.f32 %v153_v59, %v152_v58  ;;  %p257_p6 = pnand %p256_p5, %p250_p2 }
 0x309   :  { %v157_v62 = vsel %vm59_vm1, %v154_v60, %v147_v61 }
 0x30a   :  { %160 = vst.msk [vmem:[#allocation5] sm:$0x3] %vm159_vm3, %v157_v62 }
 0x30b   :  { %260 = shalt.err (!%p257_p6)
}
 0x30c   :  { %s261_s15 = scalar_lea.hbm %s359_s2, 32 }
 0x30d   :  { %p262_p7 = scmp.ne.s32.totalorder %s359_s2, %s261_s15  ;;  %p265_p8 = scmp.lt.u32.totalorder %s261_s15, %s359_s2 }
 0x30f   :  { %p267_p9 = pnand %p265_p8, %p262_p7 }
 0x311   :  { %270 = shalt.err (!%p267_p9)
}
 0x312   :  { %170 = dma.vmem_to_hbm [thread:$0]  %s168_s12, 32, %s359_s2, [#allocation4]  }
 0x313   :  { %273 = dma.done.wait [#allocation4], 32  }
 0x314   :  { %274 = vsyncadd [#allocation4], 4294967264 }
 0x315   :  { %275 = dma.done.wait [#allocation7], 32  }
 0x316   :  { %276 = vsyncadd [#allocation7], 4294967264 }
 0x317   :  { %187 = vsyncpa [#allocation3], 1 }
 0x318   :  { %188 = vsyncpa [#allocation4], 1 }
 0x319   :  { %189 = vsyncpa [#allocation7], 1 }

</bundles_post_ra>
